<compile_context>
chip_gen: v7x
topology: tpu7x:2x2x1
jax: 0.10.0
libtpu: 0.0.40
codegen_flags: <defaults>
</compile_context>

<pallas_src>
import jax
import jax.numpy as jnp
from jax import lax
from jax.experimental import pallas as pl
from jax.experimental.pallas import tpu as pltpu

_MiB = 1024 * 1024


# ---------------------------------------------------------------------------
# Kernels
# ---------------------------------------------------------------------------

def dense_ce_kernel(yp_ref, yt_ref, out_ref):
    """Dense-target CE: per-tile scalar accumulated into the (1,1) out block."""
    i = pl.program_id(1)

    @pl.when(i == 0)
    def _():
        out_ref[...] = jnp.zeros_like(out_ref)

    # Cast after load (matches .float() in the PyTorch module); math in f32.
    yp = yp_ref[...].astype(jnp.float32)
    yt = yt_ref[...].astype(jnp.float32)

    # Numerically-stable log-softmax along the class (last) axis.
    m = jnp.max(yp, axis=-1, keepdims=True)
    shifted = yp - m
    lse = jnp.log(jnp.sum(jnp.exp(shifted), axis=-1, keepdims=True))

    # sum(-y_true * logprobs) == sum(y_true * (lse - shifted)).
    # One scalar per grid step, accumulated in the resident output block
    # (no lane-sparse (tile_rows, 1) VMEM accumulator).
    out_ref[...] += jnp.sum(yt * (lse - shifted))


def onehot_ce_kernel(yp_ref, lbl_ref, out_ref):
    """Label-index fast path: identical to the dense path for one-hot targets."""
    i = pl.program_id(1)

    @pl.when(i == 0)
    def _():
        out_ref[...] = jnp.zeros_like(out_ref)

    yp = yp_ref[...].astype(jnp.float32)

    m = jnp.max(yp, axis=-1, keepdims=True)
    shifted = yp - m
    lse = jnp.log(jnp.sum(jnp.exp(shifted), axis=-1, keepdims=True))    # (rows,1)

    lbl = lbl_ref[...]                                                  # (rows,1) int32
    cols = lax.broadcasted_iota(jnp.int32, shifted.shape, 1)
    picked = jnp.sum(jnp.where(cols == lbl, shifted, 0.0),
                     axis=-1, keepdims=True)                            # shifted[label]
    valid = (lbl >= 0).astype(jnp.float32)                              # padded rows: lbl == -1

    # per-row loss = -logprob[label] = lse - shifted[label]
    out_ref[...] += jnp.sum(valid * (lse - picked))


# ---------------------------------------------------------------------------
# Planning helpers (generation-aware)
# ---------------------------------------------------------------------------

def _vmem_capacity_bytes():
    try:
        return int(pltpu.get_tpu_info().vmem_capacity_bytes)
    except Exception:
        return 128 * _MiB       # v5e / v6e default


def _default_num_splits(vmem_cap):
    # v7x: 64 MiB VMEM per TensorCore, 2 TCs/chip -> 2-way parallel batch split.
    # v5e/v6e: 128 MiB, single TC -> a split adds overhead for no parallelism.
    return 2 if vmem_cap <= 64 * _MiB else 1


def _plan(B, C, in_itemsizes, num_splits, vmem_cap):
    """Row-tile / grid / VMEM-limit planning shared by both entry points."""
    # Sublane-packing multiple: 16 covers bf16/fp8 packing, is a multiple of 8.
    mult = 16 if min(in_itemsizes) < 4 else 8
    num_splits = max(1, min(num_splits, pl.cdiv(B, mult)))

    # Live VMEM bytes per row per grid step:
    #   double-buffered input tiles + ~6 f32 temporaries materialized by the
    #   body (casts, shifted, exp, logprobs, product).
    input_row_bytes = C * sum(in_itemsizes)
    live_row_bytes = 2 * input_row_bytes + 6 * C * 4

    # Target ~2-4 MiB of input per operand per step (near HBM roofline); keep
    # the total under ~60% of physical VMEM so v7x (64 MiB/TC) stays safe.
    safe_cap = int(0.6 * vmem_cap)
    pipeline_budget = min(28 * _MiB, safe_cap)
    tile_rows = pipeline_budget // live_row_bytes
    tile_rows = min(tile_rows, (4 * _MiB) // max(C * max(in_itemsizes), 1))
    tile_rows = max(mult, (int(tile_rows) // mult) * mult)

    # Clamp to the per-split batch; padding gives every split the same trip
    # count so both v7x TensorCores stay balanced.
    rows_per_split = pl.cdiv(B, num_splits)
    tile_rows = min(tile_rows, pl.cdiv(rows_per_split, mult) * mult)
    n_row_tiles = pl.cdiv(rows_per_split, tile_rows)
    padded_B = num_splits * n_row_tiles * tile_rows

    vmem_limit = min(safe_cap,
                     max(32 * _MiB, tile_rows * live_row_bytes + 2 * _MiB))
    return num_splits, tile_rows, n_row_tiles, padded_B, vmem_limit


# ---------------------------------------------------------------------------
# Public wrappers
# ---------------------------------------------------------------------------

def dense_cross_entropy(y_pred, y_true, *, num_splits=None):
    """Full-reduction dense CE: sum(-y_true * log_softmax(y_pred, axis=-1))."""
    assert y_pred.ndim >= 2 and y_true.shape == y_pred.shape
    C = y_pred.shape[-1]
    y_pred = y_pred.reshape(-1, C)
    y_true = y_true.reshape(-1, C)
    B = y_pred.shape[0]

    vmem_cap = _vmem_capacity_bytes()
    if num_splits is None:
        num_splits = _default_num_splits(vmem_cap)

    isz = (jnp.dtype(y_pred.dtype).itemsize, jnp.dtype(y_true.dtype).itemsize)
    num_splits, tile_rows, n_row_tiles, padded_B, vmem_limit = _plan(
        B, C, isz, num_splits, vmem_cap)

    if padded_B != B:
        pad = padded_B - B
        # Zero-padded y_true rows contribute exactly zero loss.
        y_pred = jnp.pad(y_pred, ((0, pad), (0, 0)))
        y_true = jnp.pad(y_true, ((0, pad), (0, 0)))

    def row_block(c, i):
        return (c * n_row_tiles + i, 0)

    partials = pl.pallas_call(
        dense_ce_kernel,
        out_shape=jax.ShapeDtypeStruct((num_splits, 1), jnp.float32),
        grid_spec=pltpu.PrefetchScalarGridSpec(
            num_scalar_prefetch=0,
            grid=(num_splits, n_row_tiles),
            in_specs=[
                pl.BlockSpec((tile_rows, C), row_block),
                pl.BlockSpec((tile_rows, C), row_block),
            ],
            out_specs=pl.BlockSpec((1, 1), lambda c, i: (c, 0)),
        ),
        compiler_params=pltpu.CompilerParams(
            dimension_semantics=("parallel", "arbitrary"),
            vmem_limit_bytes=vmem_limit,
        ),
    )(y_pred, y_true)

    # Combine per-split partials; scalar result (.mean() of a scalar is a no-op).
    return jnp.sum(partials)


def dense_cross_entropy_from_labels(y_pred, labels, *, num_splits=None):
    """One-hot fast path: == dense_cross_entropy(y_pred, one_hot(labels)).

    Streams int32 label indices (4 B/row) instead of a dense target matrix,
    roughly halving HBM traffic for this memory-bound kernel.
    """
    assert y_pred.ndim >= 2 and labels.shape == y_pred.shape[:-1]
    C = y_pred.shape[-1]
    y_pred = y_pred.reshape(-1, C)
    labels = labels.reshape(-1, 1).astype(jnp.int32)
    B = y_pred.shape[0]

    vmem_cap = _vmem_capacity_bytes()
    if num_splits is None:
        num_splits = _default_num_splits(vmem_cap)

    isz = (jnp.dtype(y_pred.dtype).itemsize,)
    num_splits, tile_rows, n_row_tiles, padded_B, vmem_limit = _plan(
        B, C, isz, num_splits, vmem_cap)

    if padded_B != B:
        pad = padded_B - B
        y_pred = jnp.pad(y_pred, ((0, pad), (0, 0)))
        labels = jnp.pad(labels, ((0, pad), (0, 0)), constant_values=-1)

    def row_block(c, i):
        return (c * n_row_tiles + i, 0)

    partials = pl.pallas_call(
        onehot_ce_kernel,
        out_shape=jax.ShapeDtypeStruct((num_splits, 1), jnp.float32),
        grid_spec=pltpu.PrefetchScalarGridSpec(
            num_scalar_prefetch=0,
            grid=(num_splits, n_row_tiles),
            in_specs=[
                pl.BlockSpec((tile_rows, C), row_block),
                pl.BlockSpec((tile_rows, 1), row_block),
            ],
            out_specs=pl.BlockSpec((1, 1), lambda c, i: (c, 0)),
        ),
        compiler_params=pltpu.CompilerParams(
            dimension_semantics=("parallel", "arbitrary"),
            vmem_limit_bytes=vmem_limit,
        ),
    )(y_pred, labels)

    return jnp.sum(partials)


def _ref_loss(y_pred, y_true):
    yp = y_pred.astype(jnp.float32)
    yt = y_true.astype(jnp.float32)
    return jnp.sum(-yt * jax.nn.log_softmax(yp, axis=-1))


if __name__ == "__main__":
    key = jax.random.PRNGKey(0)
    k1, k2, k3, k4 = jax.random.split(key, 4)

    # Case 1: tile-friendly f32 shapes (one-hot targets).
    B, C = 16, 128
    y_pred = jax.random.normal(k1, (B, C), dtype=jnp.float32)
    labels = jax.random.randint(k2, (B,), 0, C)
    y_true = jax.nn.one_hot(labels, C, dtype=jnp.float32)

    loss = jax.block_until_ready(dense_cross_entropy(y_pred, y_true))
    ref = _ref_loss(y_pred, y_true)
    assert jnp.allclose(loss, ref, rtol=1e-5, atol=1e-5), (loss, ref)

    # Case 1b: label-index fast path (no dense y_true streamed).
    loss_oh = jax.block_until_ready(dense_cross_entropy_from_labels(y_pred, labels))
    assert jnp.allclose(loss_oh, ref, rtol=1e-5, atol=1e-5), (loss_oh, ref)

    # Case 2: ragged batch + non-128 class count + bf16 inputs (exercises
    # padding, full-extent class block, and the bf16 streaming path).
    B2, C2 = 13, 40
    y_pred2 = jax.random.normal(k3, (B2, C2), dtype=jnp.float32).astype(jnp.bfloat16)
    y_true2 = jax.nn.softmax(
        jax.random.normal(k4, (B2, C2), dtype=jnp.float32), axis=-1
    ).astype(jnp.bfloat16)

    loss2 = jax.block_until_ready(dense_cross_entropy(y_pred2, y_true2))
    ref2 = _ref_loss(y_pred2, y_true2)
    assert jnp.allclose(loss2, ref2, rtol=1e-4, atol=1e-4), (loss2, ref2)

    print("KERNEL_OK")
</pallas_src>

<mosaic_0001>
module attributes {stable_mosaic.version = 11 : i64} {
  func.func @dense_ce_kernel(%arg0: i32, %arg1: i32, %arg2: memref<16x128xf32, #tpu.memory_space<vmem>>, %arg3: memref<16x128xf32, #tpu.memory_space<vmem>>, %arg4: memref<1x1xf32, #tpu.memory_space<vmem>>) attributes {dimension_semantics = [#tpu.dimension_semantics<parallel>, #tpu.dimension_semantics<arbitrary>], iteration_bounds = array<i64: 1, 1>, scalar_prefetch = 0 : i64, scratch_operands = 0 : i64, tpu.core_type = #tpu.core_type<tc>, window_params = [{transform_indices = @transform_0, window_bounds = array<i64: 16, 128>}, {transform_indices = @transform_1, window_bounds = array<i64: 16, 128>}, {transform_indices = @transform_2, window_bounds = array<i64: 1, 1>}]} {
    %c0_i32 = arith.constant 0 : i32
    %0 = arith.cmpi eq, %arg1, %c0_i32 : i32
    %1 = arith.extui %0 : i1 to i32
    %c0_i32_0 = arith.constant 0 : i32
    %2 = arith.cmpi ne, %1, %c0_i32_0 : i32
    scf.if %2 {
      %cst_10 = arith.constant 0.000000e+00 : f32
      %24 = vector.broadcast %cst_10 : f32 to vector<1x1xf32>
      %c0_11 = arith.constant 0 : index
      %c0_12 = arith.constant 0 : index
      %25 = vector.load %arg4[%c0_11, %c0_12] : memref<1x1xf32, #tpu.memory_space<vmem>>, vector<1x1xf32>
      tpu.vector_store %arg4[%c0_11, %c0_12], %24 {strides = array<i32>} : memref<1x1xf32, #tpu.memory_space<vmem>>, vector<1x1xf32>,
    } else {
    }
    %c0 = arith.constant 0 : index
    %c0_1 = arith.constant 0 : index
    %3 = vector.load %arg2[%c0, %c0_1] : memref<16x128xf32, #tpu.memory_space<vmem>>, vector<16x128xf32>
    %c0_2 = arith.constant 0 : index
    %c0_3 = arith.constant 0 : index
    %4 = vector.load %arg3[%c0_2, %c0_3] : memref<16x128xf32, #tpu.memory_space<vmem>>, vector<16x128xf32>
    %cst = arith.constant dense<0xFF800000> : vector<16xf32>
    %5 = vector.multi_reduction <maximumf>, %3, %cst [1] : vector<16x128xf32> to vector<16xf32>
    %6 = vector.shape_cast %5 : vector<16xf32> to vector<16x1xf32>
    %7 = vector.broadcast %6 : vector<16x1xf32> to vector<16x128xf32>
    %8 = arith.subf %3, %7 : vector<16x128xf32>
    %9 = math.exp %8 : vector<16x128xf32>
    %cst_4 = arith.constant dense<0.000000e+00> : vector<16xf32>
    %10 = vector.multi_reduction <add>, %9, %cst_4 [1] : vector<16x128xf32> to vector<16xf32>
    %11 = vector.shape_cast %10 : vector<16xf32> to vector<16x1xf32>
    %12 = math.log %11 : vector<16x1xf32>
    %c0_5 = arith.constant 0 : index
    %c0_6 = arith.constant 0 : index
    %13 = vector.load %arg4[%c0_5, %c0_6] : memref<1x1xf32, #tpu.memory_space<vmem>>, vector<1x1xf32>
    %14 = vector.broadcast %12 : vector<16x1xf32> to vector<16x128xf32>
    %15 = arith.subf %14, %8 : vector<16x128xf32>
    %16 = arith.mulf %4, %15 : vector<16x128xf32>
    %17 = vector.shape_cast %16 : vector<16x128xf32> to vector<1x16x128xf32>
    %cst_7 = arith.constant dense<0.000000e+00> : vector<1xf32>
    %18 = vector.multi_reduction <add>, %17, %cst_7 [1, 2] : vector<1x16x128xf32> to vector<1xf32>
    %19 = vector.shape_cast %18 : vector<1xf32> to vector<1x1x1xf32>
    %20 = vector.extract %19[0, 0, 0] : f32 from vector<1x1x1xf32>
    %21 = vector.broadcast %20 : f32 to vector<1x1xf32>
    %22 = arith.addf %13, %21 : vector<1x1xf32>
    %c0_8 = arith.constant 0 : index
    %c0_9 = arith.constant 0 : index
    %23 = vector.load %arg4[%c0_8, %c0_9] : memref<1x1xf32, #tpu.memory_space<vmem>>, vector<1x1xf32>
    tpu.vector_store %arg4[%c0_8, %c0_9], %22 {strides = array<i32>} : memref<1x1xf32, #tpu.memory_space<vmem>>, vector<1x1xf32>,
    return
  }
  func.func @transform_0(%arg0: i32, %arg1: i32) -> (i32, i32) {
    %c1_i32 = arith.constant 1 : i32
    %0 = arith.muli %arg0, %c1_i32 : i32
    %1 = arith.addi %0, %arg1 : i32
    %c0_i32 = arith.constant 0 : i32
    %c0_i32_0 = arith.constant 0 : i32
    return %1, %c0_i32 : i32, i32
  }
  func.func @transform_1(%arg0: i32, %arg1: i32) -> (i32, i32) {
    %c1_i32 = arith.constant 1 : i32
    %0 = arith.muli %arg0, %c1_i32 : i32
    %1 = arith.addi %0, %arg1 : i32
    %c0_i32 = arith.constant 0 : i32
    %c0_i32_0 = arith.constant 0 : i32
    return %1, %c0_i32 : i32, i32
  }
  func.func @transform_2(%arg0: i32, %arg1: i32) -> (i32, i32) {
    %c0_i32 = arith.constant 0 : i32
    %c0_i32_0 = arith.constant 0 : i32
    return %arg0, %c0_i32 : i32, i32
  }
}

</mosaic_0001>

<bundles_post_ra>
// kernel: tpu_custom_call.1
= control target key start
LH: loop header
LB: loop body
LE: loop exit
PB: predicated region body
PF: predicated region fallthrough
CT: control target
= control target key end

     0   :  { %7 = vsyncpa [#allocation3], 0  ;;  %s262_s0 = inlined_call_operand.hbm [shape: f32[16,128], index: 0, kind: input, shape index: {}]   ;;  %s263_s1 = inlined_call_operand.hbm [shape: f32[16,128], index: 1, kind: input, shape index: {}]   ;;  %s264_s2 = inlined_call_operand.hbm [shape: f32[1,1], index: 2, kind: output, shape index: {}]  }
   0x1   :  { %8 = vsyncpa [#allocation6], 0 }
   0x2   :  { %9 = vsyncpa [#allocation4], 0  ;;  %s203_s9 = smov [#allocation2]   ;;  %s131_s13 = scalar_lea.hbm %s262_s0, 256 }
   0x3   :  { %s19_s10 = sshll.u32 %s203_s9, 4  ;;  %p132_p0 = scmp.ne.s32.totalorder %s262_s0, %s131_s13  ;;  %s20_s10 = int_to_ptr.vmem [resolvable:$true] %s19_s10 }
   0x4   :  { %p135_p1 = scmp.lt.u32.totalorder %s131_s13, %s262_s0 }
   0x6   :  { %p137_p2 = pnand %p135_p1, %p132_p0 }
   0x8   :  { %140 = shalt.err (!%p137_p2)
}
   0x9   :  { %s141_s18 = scalar_lea.vmem %s20_s10, 256  ;;  %p146_p4 = scmp.lt.s32.totalorder %s20_s10, %s20_s10 }
   0xa   :  { %p142_p3 = scmp.ne.s32.totalorder %s20_s10, %s141_s18  ;;  %p147_p5 = scmp.lt.s32.totalorder %s141_s18, %s141_s18 }
   0xc   :  { %p148_p6 = por %p147_p5, %p146_p4 }
   0xe   :  { %p149_p7 = pnand %p148_p6, %p142_p3 }
  0x10   :  { %152 = shalt.err (!%p149_p7)
}
  0x11   :  { %s204_s19 = smov 128   ;;  %s205_s20 = smov 8  }
  0x12   :  { %25 = dma.hbm_to_vmem [thread:$0]  %s262_s0, 256, %s20_s10, [#allocation3], %s204_s19, %s204_s19, %s205_s20  }
  0x13   :  { %s206_s23 = smov [#allocation5]   ;;  %s153_s27 = scalar_lea.hbm %s263_s1, 256 }
  0x14   :  { %s35_s24 = sshll.u32 %s206_s23, 4  ;;  %p154_p8 = scmp.ne.s32.totalorder %s263_s1, %s153_s27  ;;  %s36_s24 = int_to_ptr.vmem [resolvable:$true] %s35_s24 }
  0x15   :  { %p157_p9 = scmp.lt.u32.totalorder %s153_s27, %s263_s1 }
  0x17   :  { %p159_p10 = pnand %p157_p9, %p154_p8 }
  0x19   :  { %162 = shalt.err (!%p159_p10)
}
  0x1a   :  { %s163_s4 = scalar_lea.vmem %s36_s24, 256  ;;  %p168_p12 = scmp.lt.s32.totalorder %s36_s24, %s36_s24 }
  0x1b   :  { %p164_p11 = scmp.ne.s32.totalorder %s36_s24, %s163_s4  ;;  %p169_p13 = scmp.lt.s32.totalorder %s163_s4, %s163_s4 }
  0x1d   :  { %p170_p0 = por %p169_p13, %p168_p12 }
  0x1f   :  { %p171_p1 = pnand %p170_p0, %p164_p11 }
  0x21   :  { %174 = shalt.err (!%p171_p1)
}
  0x22   :  { %41 = dma.hbm_to_vmem [thread:$0]  %s263_s1, 256, %s36_s24, [#allocation6], %s204_s19, %s204_s19, %s205_s20  }
  0x23   :  { %197 = dma.done.wait [#allocation3], 256  }
  0x24   :  { %198 = vsyncadd [#allocation3], 4294967040 }
  0x25   :  { %199 = dma.done.wait [#allocation6], 256  }
  0x26   :  { %200 = vsyncadd [#allocation6], 4294967040  ;;  %vm56_vm0 = vcmask 0   ;;  %v207_v0 = vmov 0.0   ;;  %v58_v1 = vld [vmem:[#allocation2] sm:$0xff]  ;;  %v59_v2 = vld [vmem:[#allocation2 + $0x8] sm:$0xff] }
  0x27   :  { %57 = vst.msk [vmem:[#allocation7] sm:$0x1] %vm56_vm0, %v207_v0  ;;  %62 = vmax.xlane.f32.xlu0 %v58_v1  ;;  %v60_v18 = vld [vmem:[#allocation5] sm:$0xff]  ;;  %v61_v19 = vld [vmem:[#allocation5 + $0x8] sm:$0xff]  ;;  %s208_s1 = smov [#allocation7]  }
  0x28   :  { %s105_s6 = sshll.u32 %s208_s1, 4  ;;  %s106_s6 = int_to_ptr.vmem [resolvable:$true] %s105_s6 }
  0x29   :  { %s175_s8 = scalar_lea.vmem %s106_s6, 16  ;;  %s179_s9 = scalar_lea.vmem %s106_s6, 32 }
  0x2a   :  { %p176_p2 = scmp.ne.s32.totalorder %s106_s6, %s175_s8  ;;  %p180_p3 = scmp.lt.s32.totalorder %s106_s6, %s106_s6 }
  0x2b   :  { %64 = vmax.xlane.f32.xlu0 %v59_v2  ;;  %p181_p4 = scmp.lt.s32.totalorder %s179_s9, %s175_s8 }
  0x2d   :  { %p182_p5 = por %p181_p4, %p180_p3 }
  0x2e   :  { %v80_v31 = vld [vmem:[#allocation7] sm:$0x1] }
  0x2f   :  { %p183_p6 = pnand %p182_p5, %p176_p2 }
  0xb4   :  { %v63_v3 = vpop.xlane.xlu0 %62 }
  0xb5   :  { %v66_v4 = vsub.f32 %v58_v1, %v63_v3 }
  0xb7   :  { %v68_v5 = vmul.f32 1.442695, %v66_v4 }
  0xb8   :  { %v65_v6 = vpop.xlane.xlu0 %64 }
  0xb9   :  { %v67_v7 = vsub.f32 %v59_v2, %v65_v6  ;;  %123 = vpow2.f32 %v68_v5 }
  0xbb   :  { %v70_v8 = vmul.f32 1.442695, %v67_v7 }
  0xbd   :  { %125 = vpow2.f32 %v70_v8 }
  0xc3   :  { %v124_v9 = vpop.eup %123 }
  0xc4   :  { %72 = vadd.xlane.f32.xlu1 %v124_v9 }
  0xc7   :  { %v126_v10 = vpop.eup %125 }
  0xc8   :  { %74 = vadd.xlane.f32.xlu1 %v126_v10 }
 0x151   :  { %v73_v11 = vpop.xlane.xlu1 %72 }
 0x152   :  { %127 = vlog2.f32 %v73_v11 }
 0x155   :  { %v75_v12 = vpop.xlane.xlu1 %74 }
 0x156   :  { %129 = vlog2.f32 %v75_v12 }
 0x15c   :  { %v128_v13 = vpop.eup %127 }
 0x15d   :  { %v77_v14 = vmul.f32 0.6931472, %v128_v13 }
 0x15f   :  { %v81_v16 = vsub.f32 %v77_v14, %v66_v4 }
 0x160   :  { %v130_v15 = vpop.eup %129 }
 0x161   :  { %v79_v17 = vmul.f32 0.6931472, %v130_v15  ;;  %v83_v21 = vmul.f32 %v81_v16, %v60_v18 }
 0x163   :  { %v82_v20 = vsub.f32 %v79_v17, %v67_v7 }
 0x165   :  { %v84_v22 = vmul.f32 %v82_v20, %v61_v19 }
 0x167   :  { %v85_v23 = vadd.f32 %v84_v22, %v83_v21 }
 0x169   :  { %86 = vadd.xlane.f32.xlu0 %v85_v23 }
 0x1f6   :  { %v87_v24 = vpop.xlane.xlu0 %86 }
 0x1f7   :  { %v88_v25 = vrot.slane %v87_v24, 4 }
 0x1f9   :  { %v89_v26 = vadd.f32 %v88_v25, %v87_v24 }
 0x1fb   :  { %v90_v27 = vrot.slane %v89_v26, 2 }
 0x1fd   :  { %v91_v28 = vadd.f32 %v90_v27, %v89_v26 }
 0x1ff   :  { %v92_v29 = vrot.slane %v91_v28, 1 }
 0x201   :  { %v93_v30 = vadd.f32 %v92_v29, %v91_v28 }
 0x203   :  { %115 = vpush %v93_v30 }
 0x234   :  { %s116_s7 = spop %115 }
 0x235   :  { %v95_v32 = vstv %s116_s7 }
 0x236   :  { %v96_v33 = vadd.f32 %v95_v32, %v80_v31 }
 0x238   :  { %98 = vst.msk [vmem:[#allocation7] sm:$0x1] %vm56_vm0, %v96_v33 }
 0x239   :  { %186 = shalt.err (!%p183_p6)
}
 0x23a   :  { %s187_s12 = scalar_lea.hbm %s264_s2, 16 }
 0x23b   :  { %p188_p7 = scmp.ne.s32.totalorder %s264_s2, %s187_s12  ;;  %p191_p8 = scmp.lt.u32.totalorder %s187_s12, %s264_s2 }
 0x23d   :  { %p193_p9 = pnand %p191_p8, %p188_p7 }
 0x23f   :  { %196 = shalt.err (!%p193_p9)
}
 0x240   :  { %108 = dma.vmem_to_hbm [thread:$0]  %s106_s6, 16, %s264_s2, [#allocation4]  }
 0x241   :  { %201 = dma.done.wait [#allocation4], 16  }
 0x242   :  { %202 = vsyncadd [#allocation4], 4294967280 }
 0x243   :  { %112 = vsyncpa [#allocation3], 1 }
 0x244   :  { %113 = vsyncpa [#allocation6], 1 }
 0x245   :  { %114 = vsyncpa [#allocation4], 1 }

</bundles_post_ra>
